<compile_context>
chip_gen: v5e
topology: v5e:2x2
jax: 0.10.0
libtpu: 0.0.40
codegen_flags: <defaults>
</compile_context>

<pallas_src>
import functools

import numpy as np
import jax
import jax.numpy as jnp
from jax.experimental import pallas as pl
from jax.experimental.pallas import tpu as pltpu


def _adaptive_avg_pool_matrix(out_size: int, in_size: int) -> np.ndarray:
    """Row matrix M (out_size, in_size) s.t. M @ x == 1-D adaptive average pooling."""
    m = np.zeros((out_size, in_size), dtype=np.float32)
    for i in range(out_size):
        start = (i * in_size) // out_size
        end = -((-(i + 1) * in_size) // out_size)  # ceil((i+1)*in/out)
        m[i, start:end] = 1.0 / float(end - start)
    return m


def _multiscale_epe_kernel(tgt_ref, awt_ref, *rest, b_tile, c, H, scale_hw, w_offsets):
    """Processes B_TILE batch elements: pooled targets for every scale, per-scale EPE sums.

    Refs:
      tgt_ref  : (b_tile, c*H, W)  bf16  full-res targets for this batch tile
      awt_ref  : (W, sum_wp)       bf16  concatenated, 128-lane-aligned A_w^T for all scales
      rest     : out_ref_s  (b_tile, c, h_s, w_s) bf16   for each scale,
                 ah_ref_s   (h_s, H)               f32    for each scale,
                 sums_ref_s (b_tile, 1, 1)         f32    output per-scale partial sums.
    """
    ns = len(scale_hw)
    out_refs = rest[:ns]
    ah_refs = rest[ns:2 * ns]
    sums_refs = rest[2 * ns:3 * ns]

    awt = awt_ref[...]                               # (W, sum_wp) bf16, resident

    for n in range(b_tile):
        # Single lane-dense width-pooling matmul shared by every scale (bf16 MXU, f32 acc).
        tmp = jnp.dot(tgt_ref[n], awt,
                      preferred_element_type=jnp.float32)     # (c*H, sum_wp) f32

        for s, (h, w) in enumerate(scale_hw):
            off = w_offsets[s]                       # multiple of 128 -> lane-aligned slice
            ah = ah_refs[s][...]                     # (h, H) f32
            acc = None
            for j in range(c):
                # Rows j*H are 8-aligned whenever H % 8 == 0 (typical); correct regardless.
                tmp_sj = tmp[j * H:(j + 1) * H, off:off + w]            # (H, w) f32
                pooled = jnp.dot(ah, tmp_sj,
                                 preferred_element_type=jnp.float32)    # (h, w) f32
                d = pooled - out_refs[s][n, j]       # bf16 output promoted to f32
                sq = d * d
                acc = sq if acc is None else acc + sq
            # TODO(synk): add a small eps inside sqrt when a backward pass is added.
            sums_refs[s][n] = jnp.sum(jnp.sqrt(acc), keepdims=True)      # (1, 1) f32


def _pick_batch_tile(b, per_elem_bytes):
    """Largest batch tile that divides b, keeps >=2 grid steps (v7x megacore), fits budget."""
    budget = 4 << 20
    best = 1
    for d in range(1, b + 1):
        if b % d != 0:
            continue
        if b >= 2 and (b // d) < 2:
            continue
        if d * per_elem_bytes > budget:
            continue
        best = d
    return best


def _multiscale_epe_sums(outputs, target):
    """Returns a tuple (one per scale) of (b, 1, 1) per-batch-element EPE sums."""
    b, c, H, W = (int(d) for d in target.shape)
    ns = len(outputs)
    scale_hw = tuple((int(o.shape[2]), int(o.shape[3])) for o in outputs)
    for o in outputs:
        assert int(o.shape[0]) == b and int(o.shape[1]) == c

    # Host-side constants: concatenated width-pooling matrix (bf16, columns zero-padded so
    # every scale's segment starts at a 128-lane boundary) + per-scale (h, H) height mats.
    awt_cols, w_offsets = [], []
    off = 0
    for (h, w) in scale_hw:
        w_pad = -((-w) // 128) * 128
        aw_t = _adaptive_avg_pool_matrix(w, W).T                      # (W, w)
        if w_pad > w:
            aw_t = np.concatenate([aw_t, np.zeros((W, w_pad - w), np.float32)], axis=1)
        awt_cols.append(aw_t)
        w_offsets.append(off)
        off += w_pad
    sum_wp = off
    awt_all = jnp.asarray(np.concatenate(awt_cols, axis=1), dtype=jnp.bfloat16)  # (W, sum_wp)
    ah_arrs = [jnp.asarray(_adaptive_avg_pool_matrix(h, H)) for (h, w) in scale_hw]

    # bf16 I/O: halves HBM traffic on the dominant full-res target stream; arithmetic
    # inside the kernel is f32 (matmul accumulation + diff/square/sqrt).
    tgt3 = target.astype(jnp.bfloat16).reshape(b, c * H, W)
    out_bf = [o.astype(jnp.bfloat16) for o in outputs]

    bpe = 2  # bytes per element of the bf16 input streams
    per_elem_bytes = bpe * (c * H * W + sum(c * h * w for (h, w) in scale_hw))
    b_tile = _pick_batch_tile(b, per_elem_bytes)
    grid = (b // b_tile,)

    tgt_spec = pl.BlockSpec((b_tile, c * H, W), lambda i: (i, 0, 0))
    awt_spec = pl.BlockSpec((W, sum_wp), lambda i: (0, 0))
    out_in_specs = [pl.BlockSpec((b_tile, c, h, w), lambda i: (i, 0, 0, 0))
                    for (h, w) in scale_hw]
    ah_specs = [pl.BlockSpec((h, H), lambda i: (0, 0)) for (h, w) in scale_hw]
    sums_specs = tuple(pl.BlockSpec((b_tile, 1, 1), lambda i: (i, 0, 0)) for _ in range(ns))
    sums_shapes = tuple(jax.ShapeDtypeStruct((b, 1, 1), jnp.float32) for _ in range(ns))

    # Rough cost model (helps XLA schedule this memory-bound call). bf16 input bytes.
    flops = b * (2 * (c * H) * W * sum_wp
                 + sum(2 * c * h * H * w for (h, w) in scale_hw)
                 + sum(4 * c * h * w for (h, w) in scale_hw))
    transcendentals = b * sum(h * w for (h, w) in scale_hw)
    bytes_accessed = (bpe * (b * c * H * W + sum(b * c * h * w for (h, w) in scale_hw))
                      + bpe * W * sum_wp
                      + 4 * sum(h * H for (h, w) in scale_hw)
                      + 4 * b * ns)

    # VMEM budget from actual demand: double-buffered per-step inputs/outputs + resident
    # pooling matrices + f32 intermediates + headroom. Clamped to 48 MiB so it stays well
    # below the 64 MiB physical per-TensorCore VMEM on v7x.
    step_in = b_tile * per_elem_bytes
    step_out = b_tile * ns * 4
    resident = bpe * W * sum_wp + 4 * sum(h * H for (h, w) in scale_hw)
    interm = 4 * (c * H * sum_wp) + 16 * max(h * w for (h, w) in scale_hw)
    vmem_limit = int(min(48 << 20,
                         max(16 << 20,
                             2 * (step_in + step_out) + 2 * resident + interm + (4 << 20))))

    kernel = functools.partial(_multiscale_epe_kernel,
                               b_tile=b_tile, c=c, H=H, scale_hw=scale_hw,
                               w_offsets=tuple(int(x) for x in w_offsets))

    sums = pl.pallas_call(
        kernel,
        out_shape=sums_shapes,
        grid=grid,
        in_specs=[tgt_spec, awt_spec] + out_in_specs + ah_specs,
        out_specs=sums_specs,
        compiler_params=pltpu.CompilerParams(
            dimension_semantics=("parallel",),
            vmem_limit_bytes=vmem_limit),
        cost_estimate=pl.CostEstimate(flops=int(flops),
                                      transcendentals=int(transcendentals),
                                      bytes_accessed=int(bytes_accessed)),
    )(tgt3, awt_all, *out_bf, *ah_arrs)
    return sums


class MultiscaleEPE:
    """JAX/Pallas equivalent of the PyTorch MultiscaleEPE module (sparse=False)."""

    def __init__(self, multiscale_weights):
        self.w_m = multiscale_weights

    def __call__(self, output_disparity, label_disparity):
        outputs = output_disparity
        if not isinstance(outputs, (tuple, list)):
            outputs = [outputs]
        weights = self.w_m
        if weights is None:
            weights = [0.001, 0.005, 0.01, 0.02, 0.08, 0.32]
        assert len(weights) == len(outputs)

        b = int(outputs[0].shape[0])
        sums = _multiscale_epe_sums(list(outputs), label_disparity)   # tuple of (b,1,1)
        loss = jnp.float32(0.0)
        for wgt, s in zip(weights, sums):
            loss = loss + jnp.float32(wgt) * jnp.sum(s)
        # loss = sum_s w_s * (epe_sum_s / b)   (all scales share the same batch size)
        return loss / jnp.float32(b)


def _reference_loss(outputs, target, weights):
    """Pure NumPy reference (matches the PyTorch forward with sparse=False)."""
    loss = 0.0
    for out, wgt in zip(outputs, weights):
        b, _, h, w = out.shape
        H, W = target.shape[2:]
        ah = _adaptive_avg_pool_matrix(h, H)
        aw = _adaptive_avg_pool_matrix(w, W)
        pooled = np.einsum('uH,bcHW,vW->bcuv', ah, target, aw)
        epe = np.sqrt(((pooled - out) ** 2).sum(axis=1))
        loss += wgt * (epe.sum() / b)
    return loss


if __name__ == "__main__":
    key = jax.random.PRNGKey(0)
    b, c, H, W = 2, 2, 16, 16
    k1, k2, k3, k4 = jax.random.split(key, 4)

    label_disparity = jax.random.normal(k1, (b, c, H, W), jnp.float32)
    output_pyramid = [
        jax.random.normal(k2, (b, c, 16, 16), jnp.float32),
        jax.random.normal(k3, (b, c, 8, 8), jnp.float32),
        jax.random.normal(k4, (b, c, 4, 4), jnp.float32),
    ]
    multiscale_weights = (0.005, 0.01, 0.02)

    module = MultiscaleEPE(multiscale_weights)
    loss = module(output_pyramid, label_disparity)
    loss = jax.block_until_ready(loss)

    ref = _reference_loss(
        [np.asarray(o) for o in output_pyramid],
        np.asarray(label_disparity),
        multiscale_weights,
    )
    # Tolerance accounts for bf16 quantization of the target/outputs/pooling weights
    # (single-pass bf16 MXU); the f32 PyTorch module differs at the ~0.1-0.5% level.
    assert np.allclose(float(loss), float(ref), rtol=1e-2, atol=1e-2), (float(loss), float(ref))
    print("KERNEL_OK")
</pallas_src>

<mosaic_0001>
module attributes {stable_mosaic.version = 11 : i64} {
  func.func @_multiscale_epe_kernel(%arg0: i32, %arg1: memref<1x32x16xbf16, #tpu.memory_space<vmem>>, %arg2: memref<16x384xbf16, #tpu.memory_space<vmem>>, %arg3: memref<1x2x16x16xbf16, #tpu.memory_space<vmem>>, %arg4: memref<1x2x8x8xbf16, #tpu.memory_space<vmem>>, %arg5: memref<1x2x4x4xbf16, #tpu.memory_space<vmem>>, %arg6: memref<16x16xf32, #tpu.memory_space<vmem>>, %arg7: memref<8x16xf32, #tpu.memory_space<vmem>>, %arg8: memref<4x16xf32, #tpu.memory_space<vmem>>, %arg9: memref<1x1x1xf32, #tpu.memory_space<vmem>>, %arg10: memref<1x1x1xf32, #tpu.memory_space<vmem>>, %arg11: memref<1x1x1xf32, #tpu.memory_space<vmem>>) attributes {dimension_semantics = [#tpu.dimension_semantics<parallel>], iteration_bounds = array<i64: 2>, scalar_prefetch = 0 : i64, scratch_operands = 0 : i64, tpu.core_type = #tpu.core_type<tc>, window_params = [{transform_indices = @transform_0, window_bounds = array<i64: 1, 32, 16>}, {pipeline_mode = #tpu.pipeline_mode<synchronous>, transform_indices = @transform_1, window_bounds = array<i64: 16, 384>}, {transform_indices = @transform_2, window_bounds = array<i64: 1, 2, 16, 16>}, {transform_indices = @transform_3, window_bounds = array<i64: 1, 2, 8, 8>}, {transform_indices = @transform_4, window_bounds = array<i64: 1, 2, 4, 4>}, {pipeline_mode = #tpu.pipeline_mode<synchronous>, transform_indices = @transform_5, window_bounds = array<i64: 16, 16>}, {pipeline_mode = #tpu.pipeline_mode<synchronous>, transform_indices = @transform_6, window_bounds = array<i64: 8, 16>}, {pipeline_mode = #tpu.pipeline_mode<synchronous>, transform_indices = @transform_7, window_bounds = array<i64: 4, 16>}, {transform_indices = @transform_8, window_bounds = array<i64: 1, 1, 1>}, {transform_indices = @transform_9, window_bounds = array<i64: 1, 1, 1>}, {transform_indices = @transform_10, window_bounds = array<i64: 1, 1, 1>}]} {
    %c0 = arith.constant 0 : index
    %c0_0 = arith.constant 0 : index
    %0 = vector.load %arg2[%c0, %c0_0] : memref<16x384xbf16, #tpu.memory_space<vmem>>, vector<16x384xbf16>
    %c0_1 = arith.constant 0 : index
    %c0_2 = arith.constant 0 : index
    %c0_3 = arith.constant 0 : index
    %1 = vector.load %arg1[%c0_1, %c0_2, %c0_3] : memref<1x32x16xbf16, #tpu.memory_space<vmem>>, vector<1x32x16xbf16>
    %2 = vector.shape_cast %1 : vector<1x32x16xbf16> to vector<32x16xbf16>
    %cst = arith.constant dense<0.000000e+00> : vector<32x384xf32>
    %3 = tpu.matmul %2, %0, %cst {dimension_numbers = #tpu.dot_dimension_numbers<[1], [0], [0], [1], [0, 0, 1, 1], [], []>} : vector<32x16xbf16>, vector<16x384xbf16>, vector<32x384xf32> -> vector<32x384xf32>
    %c0_4 = arith.constant 0 : index
    %c0_5 = arith.constant 0 : index
    %4 = vector.load %arg6[%c0_4, %c0_5] : memref<16x16xf32, #tpu.memory_space<vmem>>, vector<16x16xf32>
    %5 = vector.extract_strided_slice %3 {offsets = [0, 0], sizes = [16, 16], strides = [1, 1]} : vector<32x384xf32> to vector<16x16xf32>
    %cst_6 = arith.constant dense<0.000000e+00> : vector<16x16xf32>
    %6 = tpu.matmul %4, %5, %cst_6 {dimension_numbers = #tpu.dot_dimension_numbers<[1], [0], [0], [1], [0, 0, 1, 1], [], []>} : vector<16x16xf32>, vector<16x16xf32>, vector<16x16xf32> -> vector<16x16xf32>
    %c0_7 = arith.constant 0 : index
    %c0_8 = arith.constant 0 : index
    %c0_9 = arith.constant 0 : index
    %c0_10 = arith.constant 0 : index
    %7 = vector.load %arg3[%c0_7, %c0_8, %c0_9, %c0_10] : memref<1x2x16x16xbf16, #tpu.memory_space<vmem>>, vector<1x1x16x16xbf16>
    %8 = vector.shape_cast %7 : vector<1x1x16x16xbf16> to vector<16x16xbf16>
    %9 = arith.extf %8 : vector<16x16xbf16> to vector<16x16xf32>
    %10 = arith.subf %6, %9 : vector<16x16xf32>
    %11 = arith.mulf %10, %10 : vector<16x16xf32>
    %12 = vector.extract_strided_slice %3 {offsets = [16, 0], sizes = [16, 16], strides = [1, 1]} : vector<32x384xf32> to vector<16x16xf32>
    %cst_11 = arith.constant dense<0.000000e+00> : vector<16x16xf32>
    %13 = tpu.matmul %4, %12, %cst_11 {dimension_numbers = #tpu.dot_dimension_numbers<[1], [0], [0], [1], [0, 0, 1, 1], [], []>} : vector<16x16xf32>, vector<16x16xf32>, vector<16x16xf32> -> vector<16x16xf32>
    %c0_12 = arith.constant 0 : index
    %c1 = arith.constant 1 : index
    %c0_13 = arith.constant 0 : index
    %c0_14 = arith.constant 0 : index
    %14 = vector.load %arg3[%c0_12, %c1, %c0_13, %c0_14] : memref<1x2x16x16xbf16, #tpu.memory_space<vmem>>, vector<1x1x16x16xbf16>
    %15 = vector.shape_cast %14 : vector<1x1x16x16xbf16> to vector<16x16xbf16>
    %16 = arith.extf %15 : vector<16x16xbf16> to vector<16x16xf32>
    %17 = arith.subf %13, %16 : vector<16x16xf32>
    %18 = arith.mulf %17, %17 : vector<16x16xf32>
    %19 = arith.addf %11, %18 : vector<16x16xf32>
    %20 = math.sqrt %19 : vector<16x16xf32>
    %21 = vector.shape_cast %20 : vector<16x16xf32> to vector<1x16x16xf32>
    %cst_15 = arith.constant dense<0.000000e+00> : vector<1xf32>
    %22 = vector.multi_reduction <add>, %21, %cst_15 [1, 2] : vector<1x16x16xf32> to vector<1xf32>
    %23 = vector.shape_cast %22 : vector<1xf32> to vector<1x1x1xf32>
    %24 = vector.extract %23[0, 0, 0] : f32 from vector<1x1x1xf32>
    %25 = vector.broadcast %24 : f32 to vector<1x1xf32>
    %c0_16 = arith.constant 0 : index
    %c0_17 = arith.constant 0 : index
    %c0_18 = arith.constant 0 : index
    %26 = vector.load %arg9[%c0_16, %c0_17, %c0_18] : memref<1x1x1xf32, #tpu.memory_space<vmem>>, vector<1x1x1xf32>
    %27 = vector.shape_cast %26 : vector<1x1x1xf32> to vector<1x1xf32>
    %28 = vector.shape_cast %25 : vector<1x1xf32> to vector<1x1x1xf32>
    tpu.vector_store %arg9[%c0_16, %c0_17, %c0_18], %28 {strides = array<i32>} : memref<1x1x1xf32, #tpu.memory_space<vmem>>, vector<1x1x1xf32>,
    %c0_19 = arith.constant 0 : index
    %c0_20 = arith.constant 0 : index
    %29 = vector.load %arg7[%c0_19, %c0_20] : memref<8x16xf32, #tpu.memory_space<vmem>>, vector<8x16xf32>
    %30 = vector.extract_strided_slice %3 {offsets = [0, 128], sizes = [16, 8], strides = [1, 1]} : vector<32x384xf32> to vector<16x8xf32>
    %cst_21 = arith.constant dense<0.000000e+00> : vector<8x8xf32>
    %31 = tpu.matmul %29, %30, %cst_21 {dimension_numbers = #tpu.dot_dimension_numbers<[1], [0], [0], [1], [0, 0, 1, 1], [], []>} : vector<8x16xf32>, vector<16x8xf32>, vector<8x8xf32> -> vector<8x8xf32>
    %c0_22 = arith.constant 0 : index
    %c0_23 = arith.constant 0 : index
    %c0_24 = arith.constant 0 : index
    %c0_25 = arith.constant 0 : index
    %32 = vector.load %arg4[%c0_22, %c0_23, %c0_24, %c0_25] : memref<1x2x8x8xbf16, #tpu.memory_space<vmem>>, vector<1x1x8x8xbf16>
    %33 = vector.shape_cast %32 : vector<1x1x8x8xbf16> to vector<8x8xbf16>
    %34 = arith.extf %33 : vector<8x8xbf16> to vector<8x8xf32>
    %35 = arith.subf %31, %34 : vector<8x8xf32>
    %36 = arith.mulf %35, %35 : vector<8x8xf32>
    %37 = vector.extract_strided_slice %3 {offsets = [16, 128], sizes = [16, 8], strides = [1, 1]} : vector<32x384xf32> to vector<16x8xf32>
    %cst_26 = arith.constant dense<0.000000e+00> : vector<8x8xf32>
    %38 = tpu.matmul %29, %37, %cst_26 {dimension_numbers = #tpu.dot_dimension_numbers<[1], [0], [0], [1], [0, 0, 1, 1], [], []>} : vector<8x16xf32>, vector<16x8xf32>, vector<8x8xf32> -> vector<8x8xf32>
    %c0_27 = arith.constant 0 : index
    %c1_28 = arith.constant 1 : index
    %c0_29 = arith.constant 0 : index
    %c0_30 = arith.constant 0 : index
    %39 = vector.load %arg4[%c0_27, %c1_28, %c0_29, %c0_30] : memref<1x2x8x8xbf16, #tpu.memory_space<vmem>>, vector<1x1x8x8xbf16>
    %40 = vector.shape_cast %39 : vector<1x1x8x8xbf16> to vector<8x8xbf16>
    %41 = arith.extf %40 : vector<8x8xbf16> to vector<8x8xf32>
    %42 = arith.subf %38, %41 : vector<8x8xf32>
    %43 = arith.mulf %42, %42 : vector<8x8xf32>
    %44 = arith.addf %36, %43 : vector<8x8xf32>
    %45 = math.sqrt %44 : vector<8x8xf32>
    %46 = vector.shape_cast %45 : vector<8x8xf32> to vector<1x8x8xf32>
    %cst_31 = arith.constant dense<0.000000e+00> : vector<1xf32>
    %47 = vector.multi_reduction <add>, %46, %cst_31 [1, 2] : vector<1x8x8xf32> to vector<1xf32>
    %48 = vector.shape_cast %47 : vector<1xf32> to vector<1x1x1xf32>
    %49 = vector.extract %48[0, 0, 0] : f32 from vector<1x1x1xf32>
    %50 = vector.broadcast %49 : f32 to vector<1x1xf32>
    %c0_32 = arith.constant 0 : index
    %c0_33 = arith.constant 0 : index
    %c0_34 = arith.constant 0 : index
    %51 = vector.load %arg10[%c0_32, %c0_33, %c0_34] : memref<1x1x1xf32, #tpu.memory_space<vmem>>, vector<1x1x1xf32>
    %52 = vector.shape_cast %51 : vector<1x1x1xf32> to vector<1x1xf32>
    %53 = vector.shape_cast %50 : vector<1x1xf32> to vector<1x1x1xf32>
    tpu.vector_store %arg10[%c0_32, %c0_33, %c0_34], %53 {strides = array<i32>} : memref<1x1x1xf32, #tpu.memory_space<vmem>>, vector<1x1x1xf32>,
    %c0_35 = arith.constant 0 : index
    %c0_36 = arith.constant 0 : index
    %54 = vector.load %arg8[%c0_35, %c0_36] : memref<4x16xf32, #tpu.memory_space<vmem>>, vector<4x16xf32>
    %55 = vector.extract_strided_slice %3 {offsets = [0, 256], sizes = [16, 4], strides = [1, 1]} : vector<32x384xf32> to vector<16x4xf32>
    %cst_37 = arith.constant dense<0.000000e+00> : vector<4x4xf32>
    %56 = tpu.matmul %54, %55, %cst_37 {dimension_numbers = #tpu.dot_dimension_numbers<[1], [0], [0], [1], [0, 0, 1, 1], [], []>} : vector<4x16xf32>, vector<16x4xf32>, vector<4x4xf32> -> vector<4x4xf32>
    %c0_38 = arith.constant 0 : index
    %c0_39 = arith.constant 0 : index
    %c0_40 = arith.constant 0 : index
    %c0_41 = arith.constant 0 : index
    %57 = vector.load %arg5[%c0_38, %c0_39, %c0_40, %c0_41] : memref<1x2x4x4xbf16, #tpu.memory_space<vmem>>, vector<1x1x4x4xbf16>
    %58 = vector.shape_cast %57 : vector<1x1x4x4xbf16> to vector<4x4xbf16>
    %59 = arith.extf %58 : vector<4x4xbf16> to vector<4x4xf32>
    %60 = arith.subf %56, %59 : vector<4x4xf32>
    %61 = arith.mulf %60, %60 : vector<4x4xf32>
    %62 = vector.extract_strided_slice %3 {offsets = [16, 256], sizes = [16, 4], strides = [1, 1]} : vector<32x384xf32> to vector<16x4xf32>
    %cst_42 = arith.constant dense<0.000000e+00> : vector<4x4xf32>
    %63 = tpu.matmul %54, %62, %cst_42 {dimension_numbers = #tpu.dot_dimension_numbers<[1], [0], [0], [1], [0, 0, 1, 1], [], []>} : vector<4x16xf32>, vector<16x4xf32>, vector<4x4xf32> -> vector<4x4xf32>
    %c0_43 = arith.constant 0 : index
    %c1_44 = arith.constant 1 : index
    %c0_45 = arith.constant 0 : index
    %c0_46 = arith.constant 0 : index
    %64 = vector.load %arg5[%c0_43, %c1_44, %c0_45, %c0_46] : memref<1x2x4x4xbf16, #tpu.memory_space<vmem>>, vector<1x1x4x4xbf16>
    %65 = vector.shape_cast %64 : vector<1x1x4x4xbf16> to vector<4x4xbf16>
    %66 = arith.extf %65 : vector<4x4xbf16> to vector<4x4xf32>
    %67 = arith.subf %63, %66 : vector<4x4xf32>
    %68 = arith.mulf %67, %67 : vector<4x4xf32>
    %69 = arith.addf %61, %68 : vector<4x4xf32>
    %70 = math.sqrt %69 : vector<4x4xf32>
    %71 = vector.shape_cast %70 : vector<4x4xf32> to vector<1x4x4xf32>
    %cst_47 = arith.constant dense<0.000000e+00> : vector<1xf32>
    %72 = vector.multi_reduction <add>, %71, %cst_47 [1, 2] : vector<1x4x4xf32> to vector<1xf32>
    %73 = vector.shape_cast %72 : vector<1xf32> to vector<1x1x1xf32>
    %74 = vector.extract %73[0, 0, 0] : f32 from vector<1x1x1xf32>
    %75 = vector.broadcast %74 : f32 to vector<1x1xf32>
    %c0_48 = arith.constant 0 : index
    %c0_49 = arith.constant 0 : index
    %c0_50 = arith.constant 0 : index
    %76 = vector.load %arg11[%c0_48, %c0_49, %c0_50] : memref<1x1x1xf32, #tpu.memory_space<vmem>>, vector<1x1x1xf32>
    %77 = vector.shape_cast %76 : vector<1x1x1xf32> to vector<1x1xf32>
    %78 = vector.shape_cast %75 : vector<1x1xf32> to vector<1x1x1xf32>
    tpu.vector_store %arg11[%c0_48, %c0_49, %c0_50], %78 {strides = array<i32>} : memref<1x1x1xf32, #tpu.memory_space<vmem>>, vector<1x1x1xf32>,
    return
  }
  func.func @transform_0(%arg0: i32) -> (i32, i32, i32) {
    %c0_i32 = arith.constant 0 : i32
    %c0_i32_0 = arith.constant 0 : i32
    %c0_i32_1 = arith.constant 0 : i32
    return %arg0, %c0_i32, %c0_i32_0 : i32, i32, i32
  }
  func.func @transform_1(%arg0: i32) -> (i32, i32) {
    %c0_i32 = arith.constant 0 : i32
    %c0_i32_0 = arith.constant 0 : i32
    %c0_i32_1 = arith.constant 0 : i32
    return %c0_i32, %c0_i32_0 : i32, i32
  }
  func.func @transform_2(%arg0: i32) -> (i32, i32, i32, i32) {
    %c0_i32 = arith.constant 0 : i32
    %c0_i32_0 = arith.constant 0 : i32
    %c0_i32_1 = arith.constant 0 : i32
    %c0_i32_2 = arith.constant 0 : i32
    return %arg0, %c0_i32, %c0_i32_0, %c0_i32_1 : i32, i32, i32, i32
  }
  func.func @transform_3(%arg0: i32) -> (i32, i32, i32, i32) {
    %c0_i32 = arith.constant 0 : i32
    %c0_i32_0 = arith.constant 0 : i32
    %c0_i32_1 = arith.constant 0 : i32
    %c0_i32_2 = arith.constant 0 : i32
    return %arg0, %c0_i32, %c0_i32_0, %c0_i32_1 : i32, i32, i32, i32
  }
  func.func @transform_4(%arg0: i32) -> (i32, i32, i32, i32) {
    %c0_i32 = arith.constant 0 : i32
    %c0_i32_0 = arith.constant 0 : i32
    %c0_i32_1 = arith.constant 0 : i32
    %c0_i32_2 = arith.constant 0 : i32
    return %arg0, %c0_i32, %c0_i32_0, %c0_i32_1 : i32, i32, i32, i32
  }
  func.func @transform_5(%arg0: i32) -> (i32, i32) {
    %c0_i32 = arith.constant 0 : i32
    %c0_i32_0 = arith.constant 0 : i32
    %c0_i32_1 = arith.constant 0 : i32
    return %c0_i32, %c0_i32_0 : i32, i32
  }
  func.func @transform_6(%arg0: i32) -> (i32, i32) {
    %c0_i32 = arith.constant 0 : i32
    %c0_i32_0 = arith.constant 0 : i32
    %c0_i32_1 = arith.constant 0 : i32
    return %c0_i32, %c0_i32_0 : i32, i32
  }
  func.func @transform_7(%arg0: i32) -> (i32, i32) {
    %c0_i32 = arith.constant 0 : i32
    %c0_i32_0 = arith.constant 0 : i32
    %c0_i32_1 = arith.constant 0 : i32
    return %c0_i32, %c0_i32_0 : i32, i32
  }
  func.func @transform_8(%arg0: i32) -> (i32, i32, i32) {
    %c0_i32 = arith.constant 0 : i32
    %c0_i32_0 = arith.constant 0 : i32
    %c0_i32_1 = arith.constant 0 : i32
    return %arg0, %c0_i32, %c0_i32_0 : i32, i32, i32
  }
  func.func @transform_9(%arg0: i32) -> (i32, i32, i32) {
    %c0_i32 = arith.constant 0 : i32
    %c0_i32_0 = arith.constant 0 : i32
    %c0_i32_1 = arith.constant 0 : i32
    return %arg0, %c0_i32, %c0_i32_0 : i32, i32, i32
  }
  func.func @transform_10(%arg0: i32) -> (i32, i32, i32) {
    %c0_i32 = arith.constant 0 : i32
    %c0_i32_0 = arith.constant 0 : i32
    %c0_i32_1 = arith.constant 0 : i32
    return %arg0, %c0_i32, %c0_i32_0 : i32, i32, i32
  }
}

</mosaic_0001>

<bundles_post_ra>
// kernel: tpu_custom_call.1
= control target key start
LH: loop header
LB: loop body
LE: loop exit
PB: predicated region body
PF: predicated region fallthrough
CT: control target
= control target key end

     0   :  { %s1640_s0 = inlined_call_operand.vmem [shape: bf16[2,32,16], index: 0, kind: input, shape index: {}]   ;;  %s1641_s1 = inlined_call_operand.hbm [shape: bf16[16,384], index: 1, kind: input, shape index: {}]   ;;  %s1642_s2 = inlined_call_operand.vmem [shape: bf16[2,2,16,16], index: 2, kind: input, shape index: {}]   ;;  %s1643_s3 = inlined_call_operand.vmem [shape: bf16[2,2,8,8], index: 3, kind: input, shape index: {}]   ;;  %s1644_s4 = inlined_call_operand.hbm [shape: bf16[2,2,4,4], index: 4, kind: input, shape index: {}]   ;;  %s1645_s5 = inlined_call_operand.hbm [shape: f32[16,16], index: 5, kind: input, shape index: {}]   ;;  %s1646_s6 = inlined_call_operand.hbm [shape: f32[8,16], index: 6, kind: input, shape index: {}]   ;;  %s1647_s7 = inlined_call_operand.vmem [shape: f32[4,16], index: 7, kind: input, shape index: {}]   ;;  %s1648_s8 = inlined_call_operand.vmem [shape: f32[2,1,1], index: 8, kind: output, shape index: {0}]   ;;  %s1649_s9 = inlined_call_operand.vmem [shape: f32[2,1,1], index: 9, kind: output, shape index: {1}]   ;;  %s1650_s10 = inlined_call_operand.vmem [shape: f32[2,1,1], index: 10, kind: output, shape index: {2}]  }
   0x1   :  { %1651 = sst [smem:[#allocation13_spill]] %s1641_s1 }
   0x2   :  { %16 = vsyncpa [#allocation3], 0 }
   0x3   :  { %17 = vsyncpa [#allocation5], 0 }
   0x4   :  { %19 = vsyncpa [#allocation5 + $0x1], 0 }
   0x5   :  { %20 = vsyncpa [#allocation8], 0  ;;  %s1448_s13 = smov 0   ;;  %s1450_s14 = smov 0  }
   0x6   :  { %s1452_s15 = smov 0   ;;  %s1454_s16 = smov 0  }
   0x7 LB: > { %s1467_s17 = sadd.s32 4294967295, %s1382_s16   ;;  %p145_p0 = scmp.ne.s32.totalorder %s1374_s14, %s1370_s13  ;;  %s1382_s16 = sphi %s1454_s16, %s1660_s16   ;;  %s1378_s15 = sphi %s1452_s15, %s1659_s15   ;;  %s1374_s14 = sphi %s1450_s14, %s1658_s14   ;;  %s1370_s13 = sphi %s1448_s13, %s1657_s13  }
   0x8   : > { %p146_p1 = scmp.eq.s32.totalorder %s1467_s17, 0  ;;  %p1049_p2 = scmp.ge.s32.totalorder %s1382_s16, 1 }
   0x9   : > { %p297_p3 = scmp.lt.s32.totalorder %s1382_s16, 3  ;;  %s322_s21 = sshll.u32 %s1645_s5, 4  ;;  %s323_s21 = int_to_ptr.hbm [resolvable:$true] %s322_s21 }
   0xa   : > { %p1475_p4 = por %p146_p1, %p145_p0  ;;  %s1384_s23 = smov [#allocation6]  }
   0xb   : > { %p1482_p5 = pnand %p1049_p2, %p297_p3  ;;  %s324_s24 = sshll.u32 %s1384_s23, 4  ;;  %s325_s24 = int_to_ptr.vmem [resolvable:$true] %s324_s24 }
   0xc   : > { %s1655_s1 = sld [smem:[#allocation13_spill]]  ;;  %s1385_s29 = smov 128  }
   0xd   : > { %p1146_p6 = pneg %p1482_p5  ;;  %s1386_s30 = smov 8  }
   0xe   : > { %s1387_s11 = smov [#allocation2]   ;;  %s1388_s13 = smov 192  }
   0xf   : > { %p1490_p7 = pnand %p1146_p6, %p146_p1  ;;  %s310_s12 = sshll.u32 %s1387_s11, 4  ;;  %s311_s12 = int_to_ptr.vmem [resolvable:$true] %s310_s12 }
  0x10   : > { %s1389_s19 = smov 12   ;;  %s337_s26 = sshll.u32 %s1646_s6, 4  ;;  %s338_s26 = int_to_ptr.hbm [resolvable:$true] %s337_s26 }
  0x11   : > { %1152 = dma.hbm_to_vmem [thread:$0]  (!%p1490_p7), %s323_s21, 256, %s325_s24, [#allocation5], %s1385_s29, %s1385_s29, %s1386_s30  }
  0x12   : > { %s308_s28 = sshll.u32 %s1655_s1, 4  ;;  %s1390_s21 = smov [#allocation7]   ;;  %s309_s28 = int_to_ptr.hbm [resolvable:$true] %s308_s28 }
  0x13   : > { %1149 = dma.hbm_to_vmem [thread:$0]  (!%p1490_p7), %s309_s28, 384, %s311_s12, [#allocation3], %s1388_s13, %s1388_s13, %s1389_s19  }
  0x14   : > { %s339_s24 = sshll.u32 %s1390_s21, 4  ;;  %s1507_s27 = sadd.s32 1, %s1382_s16   ;;  %s340_s24 = int_to_ptr.vmem [resolvable:$true] %s339_s24 }
  0x15   : > { %1155 = dma.hbm_to_vmem [thread:$0]  (!%p1490_p7), %s338_s26, 128, %s340_s24, [#allocation8]  }
  0x16   : > { %s129_s29 = ssub.s32 %s1382_s16, %s1507_s27  ;;  %s132_s30 = sadd.s32 1, %s1378_s15 }
  0x17   : > { %p130_p8 = scmp.eq.s32.totalorder %s129_s29, 0  ;;  %p139_p9 = scmp.ne.s32.totalorder %s1378_s15, %s1374_s14 }
  0x18   : > { %p140_p10 = scmp.eq.s32.totalorder %s1382_s16, 0  ;;  %p1163_p11 = scmp.lt.s32.totalorder %s1382_s16, 2 }
  0x19   : > { %s1517_s28 = scalar_select %p130_p8, %s1378_s15, %s132_s30  }
  0x1a   : > { %p141_p12 = por %p140_p10, %p139_p9  ;;  %s377_s11 = sand.u32 1, %s1382_s16  }
  0x1b   : > { %s379_s12 = sand.u32 1, %s1378_s15   ;;  %s1108_s19 = sshll.u32 %s1382_s16, 2 }
  0x1c   : > { %s1054_s13 = sshll.u32 %s379_s12, 2  ;;  %s386_s23 = scalar_lea.hbm %s1644_s4, %s1108_s19 }
  0x1d   : > { %s387_s26 = sshll.u32 %s386_s23, 4  ;;  %s381_s21 = scalar_lea.vmem [#allocation4], %s1054_s13  ;;  %s388_s26 = int_to_ptr.hbm [resolvable:$true] %s387_s26 }
  0x1e   : > { %s389_s24 = sshll.u32 %s381_s21, 4  ;;  %p1527_p13 = pnand %p1163_p11, %p141_p12  ;;  %s390_s24 = int_to_ptr.vmem [resolvable:$true] %s389_s24 }
  0x1f   : > { %s378_s30 = scalar_lea.sflag [#allocation5], %s377_s11  ;;  %s1306_s1 = sshra.s32 %s388_s26, 4  ;;  %s1307_s1 = int_to_ptr.hbm [resolvable:$true] %s1306_s1 }
  0x20   : > { %s1308_s12 = scalar_lea.hbm %s1307_s1, 4  ;;  %p1310_p2 = pneg %p1527_p13 }
  0x21   : > { %p1309_p0 = scmp.ne.s32.totalorder %s1307_s1, %s1308_s12  ;;  %s1313_s20 = scalar_lea.hbm %s1644_s4, 8 }
  0x22   : > { %p1314_p7 = scmp.lt.s32.totalorder %s1307_s1, %s1644_s4  ;;  %p1315_p8 = scmp.lt.s32.totalorder %s1313_s20, %s1308_s12 }
  0x23   : > { %p1311_p3 = pnand %p1310_p2, %p1309_p0 }
  0x24   : > { %p1316_p9 = por %p1315_p8, %p1314_p7 }
  0x25   : > { %p1312_p6 = pneg %p1311_p3 }
  0x27   : > { %p1317_p10 = pnand %p1316_p9, %p1312_p6 }
  0x29   : > { %1320 = shalt.err (!%p1317_p10)
}
  0x2a   : > { %s1391_s11 = smov 32   ;;  %s1392_s23 = smov 2  }
  0x2b   : > { %1159 = dma.hbm_to_vmem [thread:$0]  (!%p1527_p13), %s388_s26, 64, %s390_s24, %s378_s30, %s1391_s11, %s1391_s11, %s1392_s23  }
  0x2c   : > { %401 = sbr.rel (%p1482_p5) target bundleno = 577 (0x241), region = 52 }
  0x31   : > { %1353 = dma.done.wait (%p146_p1), [#allocation3], 384  }
  0x32   : > { %1355 = vsyncadd (%p146_p1), [#allocation3], 4294966912  ;;  %s408_s1 = sand.u32 1, %s1467_s17   ;;  %s410_s21 = sand.u32 1, %s1374_s14  }
  0x33   : > { %s1549_s12 = sshll.u32 %s410_s21, 2  ;;  %s409_s19 = scalar_lea.sflag [#allocation5], %s408_s1 }
  0x34   : > { %s412_s29 = scalar_lea.vmem [#allocation4], %s1549_s12 }
  0x35   : > { %1357 = dma.done.wait (%p1475_p4), %s409_s19, 64  }
  0x36   : > { %1359 = vsyncadd (%p1475_p4), %s409_s19, 4294967232 }
  0x37   : > { %1361 = dma.done.wait (%p146_p1), [#allocation5], 256  }
  0x38   : > { %1363 = vsyncadd (%p146_p1), [#allocation5], 4294967040 }
  0x39   : > { %1365 = dma.done.wait (%p146_p1), [#allocation8], 128  }
  0x3a   : > { %1367 = vsyncadd (%p146_p1), [#allocation8], 4294967168  ;;  %p479_p5 = scmp.lt.s32.totalorder %s1467_s17, 1  ;;  %v1078_v0 = vld [vmem:[#allocation2] sm:$0xf]  ;;  %vm538_vm0 = vcmask 130048  }
  0x3b   : > { %v1113_v1 = vld [vmem:[#allocation2 + $0x8] sm:$0xf0]  ;;  %v1112_v2 = vld [vmem:[#allocation2 + $0x4] sm:$0xf]  ;;  %v1080_v4 = vld [vmem:[#allocation2 + $0xc] sm:$0xf0] }
  0x3c   : > { %s1662_s17 = smov (!%p479_p5, %s1467_s17), 1  ;;  %v1079_v3 = vor.u32 %v1113_v1, %v1078_v0  ;;  %v1086_v5 = vld [vmem:[#allocation2 + $0x8] sm:$0xf]  ;;  %v1114_v6 = vld [vmem:[#allocation2 + $0x10] sm:$0xf0]  ;;  %v1083_v7 = vor.u32 %v1112_v2, %v1080_v4  ;;  %v602_v16 = vld [vmem:[#allocation6] sm:$0xff] }
  0x3d   : > { %s1109_s18 = sshll.u32 %s1662_s17, 4  ;;  %v1087_v8 = vor.u32 %v1114_v6, %v1086_v5  ;;  %v714_v17 = vld [vmem:[#allocation7] sm:$0xff]  ;;  %v793_v20 = vld [vmem:[%s1647_s7] sm:$0xf]  ;;  %v603_v22 = vld [vmem:[#allocation6 + $0x8] sm:$0xff]  ;;  %s1111_s20 = sshll.u32 %s1662_s17, 3 }
  0x3e   : > { %s483_s24 = scalar_lea.vmem %s1640_s0, %s1109_s18  ;;  %552 = vmatpush.bf16.msra.mxu0 %v1079_v3  ;;  %571 = vmatpush.bf16.msra.mxu1 %v1083_v7  ;;  %s493_s11 = scalar_lea.vmem %s1643_s3, %s1111_s20  ;;  %v817_v51 = vld [vmem:[%s412_s29] sm:$0x3]  ;;  %v1105_v57 = vld [vmem:[%s412_s29 + $0x2] sm:$0x3]  ;;  %vm859_vm8 = vcmask 27648   ;;  %vm780_vm10 = vcmask 64512  }
  0x3f   : > { %v1115_v9 = vld [vmem:[%s483_s24] sm:$0xff]  ;;  %590 = vmatpush.bf16.msra.mxu2 %v1087_v8  ;;  %v1116_v10 = vld [vmem:[%s483_s24 + $0x8] sm:$0xff]  ;;  %s488_s21 = scalar_lea.vmem %s1642_s2, %s1109_s18  ;;  %v818_v55 = vunpack.c.l.bf16 %v817_v51  ;;  %v843_v0 = vunpack.c.l.bf16 %v1105_v57  ;;  %s496_s29 = scalar_lea.vmem %s1648_s8, %s1662_s17  ;;  %vm712_vm11 = vcmask 0  }
  0x40   : > { %v738_v28 = vld [vmem:[%s493_s11] sm:$0xff]   ;;  %v1125_v34 = vld [vmem:[%s488_s21 + $0x8] sm:$0xff]   ;;  %s499_s24 = scalar_lea.vmem %s1649_s9, %s1662_s17  ;;  %s502_s25 = scalar_lea.vmem %s1650_s10, %s1662_s17 }
  0x41   : > { %1088 = vmatmul.msk.bf16.vlgmr.msra.gmra.mxu0 %vm538_vm0, %v1115_v9  ;;  %1090 = vmatmul.msk.bf16.vlgmr.msra.gmra.mxu1 %vm538_vm0, %v1115_v9  ;;  %v739_v29 = vunpack.c.l.bf16 %v738_v28  ;;  %v1118_v31 = vld [vmem:[%s488_s21] sm:$0xff]   ;;  %v764_v33 = vunpack.c.h.bf16 %v738_v28  ;;  %v1123_v39 = vunpack.c.l.bf16 %v1125_v34  ;;  %v1124_v50 = vunpack.c.h.bf16 %v1125_v34 }
  0x42   : > { %1092 = vmatmul.msk.bf16.vlgmr.msra.gmra.mxu2 %vm538_vm0, %v1115_v9  ;;  %v1119_v36 = vunpack.c.l.bf16 %v1118_v31  ;;  %v1120_v47 = vunpack.c.h.bf16 %v1118_v31 }
  0x51   : > { %1089 = vmatmul.msk.bf16.gmra.mxu0 %vm538_vm0, %v1116_v10  ;;  %1091 = vmatmul.msk.bf16.gmra.mxu1 %vm538_vm0, %v1116_v10 }
  0x52   : > { %1093 = vmatmul.msk.bf16.gmra.mxu2 %vm538_vm0, %v1116_v10 }
  0xbe   : > { %v554_v11 = vpop.f32.mrf.mxu0  ;;  %v573_v12 = vpop.f32.mrf.mxu1 }
  0xc5   : > { %v592_v13 = vpop.f32.mrf.mxu2 }
  0xc6   : > { %v556_v14 = vpop.f32.mrf.mxu0  ;;  %v575_v15 = vpop.f32.mrf.mxu1 }
  0xc7   : > { %624 = vmatpush.msra.mxu3 %v556_v14  ;;  %732 = vmatpush.msrb.mxu0 %v575_v15 }
  0xc9   : > { %625 = vmatpush.msra.mxu3 %v554_v11  ;;  %733 = vmatpush.msrb.mxu0 %v573_v12 }
  0xca   : > { %1094 = vmatmul.msk.f32.vlgmr.msra.gmra.mxu3 %vm538_vm0, %v602_v16  ;;  %1100 = vmatmul.msk.f32.vlgmr.msrb.gmra.mxu0 %vm538_vm0, %v714_v17 }
  0xcd   : > { %v594_v18 = vpop.f32.mrf.mxu2 }
  0xce   : > { %v559_v19 = vpop.f32.mrf.mxu0  ;;  %811 = vmatpush.msrb.mxu2 %v594_v18  ;;  %v578_v21 = vpop.f32.mrf.mxu1 }
  0xd0   : > { %812 = vmatpush.msrb.mxu2 %v592_v13 }
  0xd1   : > { %1103 = vmatmul.msk.f32.vlgmr.msrb.gmra.mxu2 %vm538_vm0, %v793_v20 }
  0xd2   : > { %1095 = vmatmul.msk.f32.gmra.mxu3 %vm538_vm0, %v603_v22 }
  0xd5   : > { %v597_v23 = vpop.f32.mrf.mxu2 }
  0xd6   : > { %v561_v24 = vpop.f32.mrf.mxu0  ;;  %v580_v25 = vpop.f32.mrf.mxu1 }
  0xd7   : > { %655 = vmatpush.msrb.mxu3 %v561_v24  ;;  %756 = vmatpush.msrb.mxu1 %v580_v25 }
  0xd9   : > { %656 = vmatpush.msrb.mxu3 %v559_v19  ;;  %757 = vmatpush.msrb.mxu1 %v578_v21 }
  0xda   : > { %1096 = vmatmul.msk.f32.vlgmr.msrb.gmra.mxu3 %vm538_vm0, %v602_v16  ;;  %1101 = vmatmul.msk.f32.vlgmr.msrb.gmra.mxu1 %vm538_vm0, %v714_v17 }
  0xdd   : > { %v599_v26 = vpop.f32.mrf.mxu2 }
  0xde   : > { %835 = vmatpush.msra.mxu3 %v599_v26 }
  0xe0   : > { %836 = vmatpush.msra.mxu3 %v597_v23 }
  0xe2   : > { %1097 = vmatmul.msk.f32.gmra.mxu3 %vm538_vm0, %v603_v22 }
  0xea   : > { %1104 = vmatmul.msk.f32.vlgmr.msra.gmra.mxu3 %vm538_vm0, %v793_v20 }
 0x147   : > { %v735_v30 = vpop.f32.mrf.mxu0 }
 0x148   : > { %v740_v35 = vsub.f32 %v735_v30, %v739_v29 }
 0x14a   : > { %v741_v40 = vmul.f32 %v740_v35, %v740_v35 }
 0x14d   : > { %v627_v27 = vpop.f32.mrf.mxu3 }
 0x14e   : > { %v637_v42 = vsub.f32 %v627_v27, %v1119_v36 }
 0x150   : > { %v639_v46 = vmul.f32 %v637_v42, %v637_v42 }
 0x154   : > { %v814_v56 = vpop.f32.mrf.mxu2 }
 0x155   : > { %v630_v32 = vpop.f32.mrf.mxu3  ;;  %v819_v63 = vsub.f32 %v814_v56, %v818_v55 }
 0x156   : > { %v638_v52 = vsub.f32 %v630_v32, %v1120_v47 }
 0x157   : > { %v759_v37 = vpop.f32.mrf.mxu1  ;;  %v820_v5 = vmul.f32 %v819_v63, %v819_v63 }
 0x158   : > { %v765_v38 = vsub.f32 %v759_v37, %v764_v33  ;;  %v640_v58 = vmul.f32 %v638_v52, %v638_v52 }
 0x15a   : > { %v766_v41 = vmul.f32 %v765_v38, %v765_v38 }
 0x15c   : > { %v1600_v45 = vadd.f32 %v766_v41, %v741_v40 }
 0x15d   : > { %v658_v43 = vpop.f32.mrf.mxu3 }
 0x15e   : > { %v669_v44 = vsub.f32 %v658_v43, %v1123_v39  ;;  %1208 = vrsqrt.f32 %v1600_v45  ;;  %vm775_vm5 = vcmp.eq.f32.partialorder %v1600_v45, inf  ;;  %v778_v40 = vand.u32 2147483648, %v1600_v45 }
 0x15f   : > { %vm777_vm6 = vcmp.eq.f32.partialorder %v1600_v45, 0.0 }
 0x160   : > { %v671_v48 = vmul.f32 %v669_v44, %v669_v44 }
 0x162   : > { %v673_v49 = vadd.f32 %v671_v48, %v639_v46 }
 0x164   : > { %1210 = vrsqrt.f32 %v673_v49  ;;  %v1209_v60 = vpop.eup %1208  ;;  %vm682_vm1 = vcmp.eq.f32.partialorder %v673_v49, inf  ;;  %v685_v25 = vand.u32 2147483648, %v673_v49  ;;  %vm684_vm2 = vcmp.eq.f32.partialorder %v673_v49, 0.0 }
 0x165   : > { %v661_v53 = vpop.f32.mrf.mxu3  ;;  %v769_v4 = vmul.f32 %v1209_v60, %v1600_v45 }
 0x166   : > { %v670_v54 = vsub.f32 %v661_v53, %v1124_v50 }
 0x167   : > { %v770_v10 = vmul.f32 %v1209_v60, %v769_v4 }
 0x168   : > { %v672_v59 = vmul.f32 %v670_v54, %v670_v54 }
 0x169   : > { %v771_v16 = vmul.f32 0.5, %v770_v10 }
 0x16a   : > { %v1211_v61 = vpop.eup %1210  ;;  %v674_v62 = vadd.f32 %v672_v59, %v640_v58 }
 0x16b   : > { %v676_v1 = vmul.f32 %v1211_v61, %v673_v49  ;;  %v772_v20 = vsub.f32 1.5, %v771_v16 }
 0x16c   : > { %1212 = vrsqrt.f32 %v674_v62  ;;  %vm694_vm3 = vcmp.eq.f32.partialorder %v674_v62, inf  ;;  %v697_v30 = vand.u32 2147483648, %v674_v62  ;;  %vm696_vm4 = vcmp.eq.f32.partialorder %v674_v62, 0.0 }
 0x16d   : > { %v838_v2 = vpop.f32.mrf.mxu3  ;;  %v677_v3 = vmul.f32 %v1211_v61, %v676_v1  ;;  %v773_v28 = vmul.f32 %v1209_v60, %v772_v20 }
 0x16e   : > { %v844_v6 = vsub.f32 %v838_v2, %v843_v0 }
 0x16f   : > { %v678_v7 = vmul.f32 0.5, %v677_v3  ;;  %v774_v37 = vmul.f32 %v773_v28, %v1600_v45 }
 0x170   : > { %v845_v8 = vmul.f32 %v844_v6, %v844_v6 }
 0x171   : > { %v679_v9 = vsub.f32 1.5, %v678_v7  ;;  %v776_v42 = vsel %vm775_vm5, %v1600_v45, %v774_v37 }
 0x172   : > { %v1213_v11 = vpop.eup %1212  ;;  %v846_v12 = vadd.f32 %v845_v8, %v820_v5  ;;  %v779_v47 = vsel %vm777_vm6, %v778_v40, %v776_v42 }
 0x173   : > { %v680_v13 = vmul.f32 %v1211_v61, %v679_v9  ;;  %v688_v14 = vmul.f32 %v1213_v11, %v674_v62 }
 0x174   : > { %1214 = vrsqrt.f32 %v846_v12  ;;  %vm854_vm7 = vcmp.eq.f32.partialorder %v846_v12, inf  ;;  %v857_v43 = vand.u32 2147483648, %v846_v12  ;;  %vm856_vm9 = vcmp.eq.f32.partialorder %v846_v12, 0.0 }
 0x175   : > { %v689_v15 = vmul.f32 %v1213_v11, %v688_v14  ;;  %v681_v17 = vmul.f32 %v680_v13, %v673_v49 }
 0x177   : > { %v690_v18 = vmul.f32 0.5, %v689_v15  ;;  %v683_v22 = vsel %vm682_vm1, %v673_v49, %v681_v17  ;;  %v781_v49 = vsel %vm780_vm10, %v779_v47, 0.0 }
 0x178   : > { %v686_v29 = vsel %vm684_vm2, %v685_v25, %v683_v22 }
 0x179   : > { %v691_v19 = vsub.f32 1.5, %v690_v18  ;;  %v699_v34 = vsel %vm538_vm0, %v686_v29, 0.0 }
 0x17a   : > { %v1215_v21 = vpop.eup %1214 }
 0x17b   : > { %v692_v23 = vmul.f32 %v1213_v11, %v691_v19  ;;  %v848_v24 = vmul.f32 %v1215_v21, %v846_v12 }
 0x17d   : > { %v693_v26 = vmul.f32 %v692_v23, %v674_v62  ;;  %v849_v27 = vmul.f32 %v1215_v21, %v848_v24 }
 0x17f   : > { %v695_v31 = vsel %vm694_vm3, %v674_v62, %v693_v26  ;;  %v850_v32 = vmul.f32 0.5, %v849_v27 }
 0x180   : > { %v698_v33 = vsel %vm696_vm4, %v697_v30, %v695_v31 }
 0x181   : > { %v700_v35 = vsel %vm538_vm0, %v698_v33, 0.0  ;;  %v851_v36 = vsub.f32 1.5, %v850_v32 }
 0x182   : > { %v701_v38 = vadd.f32 %v700_v35, %v699_v34 }
 0x183   : > { %v852_v39 = vmul.f32 %v1215_v21, %v851_v36 }
 0x184   : > { %702 = vadd.xlane.f32.xlu0 %v701_v38 }
 0x185   : > { %v853_v41 = vmul.f32 %v852_v39, %v846_v12 }
 0x187   : > { %v855_v44 = vsel %vm854_vm7, %v846_v12, %v853_v41 }
 0x188   : > { %v858_v46 = vsel %vm856_vm9, %v857_v43, %v855_v44 }
 0x189   : > { %v860_v48 = vsel %vm859_vm8, %v858_v46, 0.0 }
 0x18a   : > { %861 = vadd.xlane.f32.xlu1 %v860_v48 }
 0x18c   : > { %782 = vadd.xlane.f32.xlu0 %v781_v49 }
 0x1f7   : > { %v703_v50 = vpop.xlane.xlu0 %702 }
 0x1f8   : > { %v704_v51 = vrot.slane %v703_v50, 4 }
 0x1fa   : > { %v705_v52 = vadd.f32 %v704_v51, %v703_v50 }
 0x1fc   : > { %v706_v53 = vrot.slane %v705_v52, 2 }
 0x1fd   : > { %v862_v54 = vpop.xlane.xlu1 %861 }
 0x1fe   : > { %v863_v55 = vrot.slane %v862_v54, 4  ;;  %v707_v56 = vadd.f32 %v706_v53, %v705_v52 }
 0x1ff   : > { %v783_v45 = vpop.xlane.xlu0 %782 }
 0x200   : > { %v864_v57 = vadd.f32 %v863_v55, %v862_v54  ;;  %v784_v58 = vrot.slane %v783_v45, 4  ;;  %v708_v59 = vrot.slane %v707_v56, 1 }
 0x202   : > { %v865_v60 = vrot.slane %v864_v57, 2  ;;  %v785_v61 = vadd.f32 %v784_v58, %v783_v45  ;;  %v709_v62 = vadd.f32 %v708_v59, %v707_v56 }
 0x204   : > { %v866_v63 = vadd.f32 %v865_v60, %v864_v57  ;;  %v786_v0 = vrot.slane %v785_v61, 2  ;;  %1126 = vpush %v709_v62 }
 0x206   : > { %v787_v1 = vadd.f32 %v786_v0, %v785_v61  ;;  %v867_v2 = vrot.slane %v866_v63, 1 }
 0x208   : > { %v788_v3 = vrot.slane %v787_v1, 1  ;;  %v868_v5 = vadd.f32 %v867_v2, %v866_v63 }
 0x20a   : > { %v789_v4 = vadd.f32 %v788_v3, %v787_v1 }
 0x20c   : > { %1128 = vpush %v789_v4 }
 0x20d   : > { %1130 = vpush %v868_v5 }
 0x235   : > { %s1127_s18 = spop %1126 }
 0x236   : > { %v711_v6 = vstv %s1127_s18 }
 0x237   : > { %713 = vst.msk [vmem:[%s496_s29] sm:$0x1] %vm712_vm11, %v711_v6 }
 0x23d   : > { %s1129_s30 = spop %1128 }
 0x23e   : > { %v791_v7 = vstv %s1129_s30  ;;  %s1131_s16 = spop %1130 }
 0x23f   : > { %792 = vst.msk [vmem:[%s499_s24] sm:$0x1] %vm712_vm11, %v791_v7  ;;  %v870_v8 = vstv %s1131_s16 }
 0x240   : > { %871 = vst.msk [vmem:[%s502_s25] sm:$0x1] %vm712_vm11, %v870_v8 }
 0x241 PF: > { %p23_p1 = scmp.ge.s32.totalorder %s1507_s27, 4   ;;  %s1657_s13 = smov %s1374_s14 }
 0x242   : > { %s1658_s14 = smov %s1378_s15  ;;  %s1659_s15 = smov %s1517_s28 }
 0x243   : > { %s1660_s16 = smov %s1507_s27  ;;  %25 = sbr.rel (!%p23_p1) target bundleno = 7 (0x7), region = 141 }
 0x248   :  { %913 = vsyncpa [#allocation3], 1 }
 0x249   :  { %915 = vsyncpa [#allocation3 + $0x1], 1 }
 0x24a   :  { %916 = vsyncpa [#allocation5], 1 }
 0x24b   :  { %918 = vsyncpa [#allocation5 + $0x1], 1 }
 0x24c   :  { %919 = vsyncpa [#allocation8], 1 }

</bundles_post_ra>
